<compile_context>
chip_gen: v5e
topology: v5e:2x2
jax: 0.10.0
libtpu: 0.0.40
codegen_flags: <defaults>
</compile_context>

<pallas_src>
import numpy as np
import jax
import jax.numpy as jnp
from jax.experimental import pallas as pl
from jax.experimental.pallas import tpu as pltpu


# ------------------------------ Pallas kernels ------------------------------

def _conv1x1_bn_relu_kernel(x_ref, w_ref, s_ref, b_ref, o_ref):
    # relu((x @ w) * scale + bias)   -- conv1(1x1, no bias) + folded BN + ReLU
    h = jnp.dot(x_ref[...].astype(jnp.bfloat16), w_ref[...],
                preferred_element_type=jnp.float32)
    h = h * s_ref[...] + b_ref[...]
    o_ref[...] = jnp.maximum(h, 0.0).astype(o_ref.dtype)


def _tail_kernel_ds(p_ref, xr_ref, w2_ref, s2_ref, b2_ref,
                    w3_ref, s3_ref, b3_ref, wd_ref, sd_ref, bd_ref, o_ref):
    # conv2(3x3 via im2col)+bn2+relu -> conv3(1x1)+bn3
    # residual = downsample conv(1x1)+bn ;  out = relu(main + residual)
    h2 = jnp.dot(p_ref[...], w2_ref[...], preferred_element_type=jnp.float32)
    h2 = jnp.maximum(h2 * s2_ref[...] + b2_ref[...], 0.0)
    y = jnp.dot(h2.astype(jnp.bfloat16), w3_ref[...],
                preferred_element_type=jnp.float32)
    y = y * s3_ref[...] + b3_ref[...]
    r = jnp.dot(xr_ref[...].astype(jnp.bfloat16), wd_ref[...],
                preferred_element_type=jnp.float32)
    r = r * sd_ref[...] + bd_ref[...]
    o_ref[...] = jnp.maximum(y + r, 0.0).astype(o_ref.dtype)


def _tail_kernel_id(p_ref, xr_ref, w2_ref, s2_ref, b2_ref,
                    w3_ref, s3_ref, b3_ref, o_ref):
    # same as above but with an identity shortcut
    h2 = jnp.dot(p_ref[...], w2_ref[...], preferred_element_type=jnp.float32)
    h2 = jnp.maximum(h2 * s2_ref[...] + b2_ref[...], 0.0)
    y = jnp.dot(h2.astype(jnp.bfloat16), w3_ref[...],
                preferred_element_type=jnp.float32)
    y = y * s3_ref[...] + b3_ref[...]
    o_ref[...] = jnp.maximum(y + xr_ref[...], 0.0).astype(o_ref.dtype)


# ----------------------------- kernel wrappers ------------------------------

def _pick_bm(m, target=256):
    """Row-tile size: whole array if small, else 256-row tiles (cdiv grid)."""
    return m if m <= target else target


def conv1x1_bn_relu(x2, w_bf16, scale, bias):
    """x2: (M, Cin) f32, w: (Cin, Cout) bf16 -> (M, Cout) f32."""
    M, Cin = x2.shape
    Cout = w_bf16.shape[1]
    bm = _pick_bm(M)
    return pl.pallas_call(
        _conv1x1_bn_relu_kernel,
        grid=(pl.cdiv(M, bm),),
        in_specs=[pl.BlockSpec((bm, Cin), lambda i: (i, 0)),
                  pl.BlockSpec((Cin, Cout), lambda i: (0, 0)),
                  pl.BlockSpec((1, Cout), lambda i: (0, 0)),
                  pl.BlockSpec((1, Cout), lambda i: (0, 0))],
        out_specs=pl.BlockSpec((bm, Cout), lambda i: (i, 0)),
        out_shape=jax.ShapeDtypeStruct((M, Cout), jnp.float32),
        compiler_params=pltpu.CompilerParams(
            dimension_semantics=("parallel",)),
    )(x2, w_bf16, scale.reshape(1, Cout), bias.reshape(1, Cout))


def conv_tail(patches_bf16, xr, w2col, s2, b2, w3, s3, b3,
              wd=None, sd=None, bd=None):
    """Fused conv2+bn2+relu+conv3+bn3+residual+relu.

    patches: (M2, 9*Cin) bf16 im2col patches of the conv1 output.
    xr:      (M2, Cin) f32 (projection shortcut input) or (M2, Cout) (identity).
    """
    M2, K9 = patches_bf16.shape
    Cmid = w2col.shape[1]
    Cout = w3.shape[1]
    Cres = xr.shape[1]
    bm = _pick_bm(M2)

    in_specs = [
        pl.BlockSpec((bm, K9), lambda i: (i, 0)),
        pl.BlockSpec((bm, Cres), lambda i: (i, 0)),
        pl.BlockSpec((K9, Cmid), lambda i: (0, 0)),
        pl.BlockSpec((1, Cmid), lambda i: (0, 0)),
        pl.BlockSpec((1, Cmid), lambda i: (0, 0)),
        pl.BlockSpec((Cmid, Cout), lambda i: (0, 0)),
        pl.BlockSpec((1, Cout), lambda i: (0, 0)),
        pl.BlockSpec((1, Cout), lambda i: (0, 0)),
    ]
    args = [patches_bf16, xr, w2col,
            s2.reshape(1, Cmid), b2.reshape(1, Cmid),
            w3, s3.reshape(1, Cout), b3.reshape(1, Cout)]

    if wd is not None:
        kernel = _tail_kernel_ds
        in_specs += [pl.BlockSpec((Cres, Cout), lambda i: (0, 0)),
                     pl.BlockSpec((1, Cout), lambda i: (0, 0)),
                     pl.BlockSpec((1, Cout), lambda i: (0, 0))]
        args += [wd, sd.reshape(1, Cout), bd.reshape(1, Cout)]
    else:
        kernel = _tail_kernel_id

    return pl.pallas_call(
        kernel,
        grid=(pl.cdiv(M2, bm),),
        in_specs=in_specs,
        out_specs=pl.BlockSpec((bm, Cout), lambda i: (i, 0)),
        out_shape=jax.ShapeDtypeStruct((M2, Cout), jnp.float32),
        compiler_params=pltpu.CompilerParams(
            dimension_semantics=("parallel",)),
    )(*args)


# ------------------------------ block forward -------------------------------

def _fold_bn(bn, eps=1e-5):
    scale = bn["gamma"] / jnp.sqrt(bn["var"] + eps)
    bias = bn["beta"] - bn["mean"] * scale
    return scale, bias


def bottleneck_forward(params, x_nchw, stride=1, downsample=False):
    """BottleneckBlock forward. x: (N, Cin, H, W) -> (N, Cout, Ho, Wo)."""
    N, Cin, H, W = x_nchw.shape
    Cout = params["w3"].shape[1]
    x = jnp.transpose(x_nchw, (0, 2, 3, 1))          # NHWC (glue layout change)
    M = N * H * W

    s1, b1 = _fold_bn(params["bn1"])
    s2, b2 = _fold_bn(params["bn2"])
    s3, b3 = _fold_bn(params["bn3"])

    # --- K1: conv1(1x1) + bn1 + relu -------------------------------------
    h1 = conv1x1_bn_relu(x.reshape(M, Cin),
                         params["w1"].astype(jnp.bfloat16), s1, b1)
    h1 = h1.reshape(N, H, W, Cin)

    # --- im2col for conv2 (3x3, padding=1, stride) -- XLA data movement ---
    Ho = (H - 1) // stride + 1
    Wo = (W - 1) // stride + 1
    h1p = jnp.pad(h1, ((0, 0), (1, 1), (1, 1), (0, 0)))
    taps = []
    for dy in range(3):
        for dx in range(3):
            taps.append(h1p[:, dy:dy + (Ho - 1) * stride + 1:stride,
                              dx:dx + (Wo - 1) * stride + 1:stride, :])
    patches = jnp.concatenate(taps, axis=-1).reshape(N * Ho * Wo, 9 * Cin)
    patches = patches.astype(jnp.bfloat16)            # halve DMA; f32 accum

    # residual source (Conv2d(k=1, stride=s) samples the strided grid)
    xr = x[:, ::stride, ::stride, :].reshape(N * Ho * Wo, Cin)

    # --- K2: conv2+bn2+relu + conv3+bn3 + residual + relu (single kernel) --
    if downsample:
        sd, bd = _fold_bn(params["bnd"])
        out2 = conv_tail(patches, xr,
                         params["w2col"].astype(jnp.bfloat16), s2, b2,
                         params["w3"].astype(jnp.bfloat16), s3, b3,
                         params["wd"].astype(jnp.bfloat16), sd, bd)
    else:
        assert stride == 1 and Cout == Cin, \
            "identity shortcut requires stride=1 and out_features==in_features"
        out2 = conv_tail(patches, xr,
                         params["w2col"].astype(jnp.bfloat16), s2, b2,
                         params["w3"].astype(jnp.bfloat16), s3, b3)

    out = out2.reshape(N, Ho, Wo, Cout)
    return jnp.transpose(out, (0, 3, 1, 2))           # back to NCHW


# ----------------------------- parameter init -------------------------------

def init_params(key, cin, cout, downsample):
    ks = jax.random.split(key, 8)

    def conv_w(k, fan_in, shape):
        return np.sqrt(2.0 / fan_in) * jax.random.normal(k, shape, jnp.float32)

    def bn(k, c):
        kg, kb, km, kv = jax.random.split(k, 4)
        return {"gamma": jax.random.uniform(kg, (c,), jnp.float32, 0.5, 1.5),
                "beta": jax.random.uniform(kb, (c,), jnp.float32, -0.2, 0.2),
                "mean": 0.1 * jax.random.normal(km, (c,), jnp.float32),
                "var": jax.random.uniform(kv, (c,), jnp.float32, 0.5, 1.5)}

    p = {
        "w1": conv_w(ks[0], cin, (cin, cin)),            # conv1: 1x1, Cin->Cin
        "bn1": bn(ks[1], cin),
        "w2col": conv_w(ks[2], 9 * cin, (9 * cin, cin)),  # conv2: 3x3 (im2col)
        "bn2": bn(ks[3], cin),
        "w3": conv_w(ks[4], cin, (cin, cout)),           # conv3: 1x1, Cin->Cout
        "bn3": bn(ks[5], cout),
    }
    if downsample:
        p["wd"] = conv_w(ks[6], cin, (cin, cout))        # projection shortcut
        p["bnd"] = bn(ks[7], cout)
    return p


# ----------------------------------- main ------------------------------------

if __name__ == "__main__":
    N, Cin, H, W = 2, 32, 16, 16
    Cout = 4 * Cin            # expansion = 4 -> 128-lane (dense) output

    key = jax.random.PRNGKey(0)
    kx, kp1, kp2 = jax.random.split(key, 3)
    x = jax.random.normal(kx, (N, Cin, H, W), jnp.float32)

    # 1) channel-expanding block with projection shortcut (stride 1)
    params = init_params(kp1, Cin, Cout, downsample=True)
    out = jax.block_until_ready(
        bottleneck_forward(params, x, stride=1, downsample=True))
    assert out.shape == (N, Cout, H, W)
    assert bool(jnp.all(jnp.isfinite(out)))
    assert bool(jnp.all(out >= 0.0))          # final ReLU

    # 2) strided block with projection shortcut (stride 2)
    out_s2 = jax.block_until_ready(
        bottleneck_forward(params, x, stride=2, downsample=True))
    assert out_s2.shape == (N, Cout, H // 2, W // 2)
    assert bool(jnp.all(jnp.isfinite(out_s2)))

    # 3) identity-shortcut block (out_features == in_features, stride 1)
    params_id = init_params(kp2, Cin, Cin, downsample=False)
    out_id = jax.block_until_ready(
        bottleneck_forward(params_id, x, stride=1, downsample=False))
    assert out_id.shape == (N, Cin, H, W)
    assert bool(jnp.all(jnp.isfinite(out_id)))

    print("KERNEL_OK")
</pallas_src>

<mosaic_0001>
module attributes {stable_mosaic.version = 11 : i64} {
  func.func @_conv1x1_bn_relu_kernel(%arg0: i32, %arg1: memref<256x32xf32, #tpu.memory_space<vmem>>, %arg2: memref<32x32xbf16, #tpu.memory_space<vmem>>, %arg3: memref<1x32xf32, #tpu.memory_space<vmem>>, %arg4: memref<1x32xf32, #tpu.memory_space<vmem>>, %arg5: memref<256x32xf32, #tpu.memory_space<vmem>>) attributes {dimension_semantics = [#tpu.dimension_semantics<parallel>], iteration_bounds = array<i64: 2>, scalar_prefetch = 0 : i64, scratch_operands = 0 : i64, tpu.core_type = #tpu.core_type<tc>, window_params = [{transform_indices = @transform_0, window_bounds = array<i64: 256, 32>}, {pipeline_mode = #tpu.pipeline_mode<synchronous>, transform_indices = @transform_1, window_bounds = array<i64: 32, 32>}, {pipeline_mode = #tpu.pipeline_mode<synchronous>, transform_indices = @transform_2, window_bounds = array<i64: 1, 32>}, {pipeline_mode = #tpu.pipeline_mode<synchronous>, transform_indices = @transform_3, window_bounds = array<i64: 1, 32>}, {transform_indices = @transform_4, window_bounds = array<i64: 256, 32>}]} {
    %c0 = arith.constant 0 : index
    %c0_0 = arith.constant 0 : index
    %0 = vector.load %arg1[%c0, %c0_0] : memref<256x32xf32, #tpu.memory_space<vmem>>, vector<256x32xf32>
    %1 = arith.truncf %0 : vector<256x32xf32> to vector<256x32xbf16>
    %c0_1 = arith.constant 0 : index
    %c0_2 = arith.constant 0 : index
    %2 = vector.load %arg2[%c0_1, %c0_2] : memref<32x32xbf16, #tpu.memory_space<vmem>>, vector<32x32xbf16>
    %cst = arith.constant dense<0.000000e+00> : vector<256x32xf32>
    %3 = tpu.matmul %1, %2, %cst {dimension_numbers = #tpu.dot_dimension_numbers<[1], [0], [0], [1], [0, 0, 1, 1], [], []>} : vector<256x32xbf16>, vector<32x32xbf16>, vector<256x32xf32> -> vector<256x32xf32>
    %c0_3 = arith.constant 0 : index
    %c0_4 = arith.constant 0 : index
    %4 = vector.load %arg3[%c0_3, %c0_4] : memref<1x32xf32, #tpu.memory_space<vmem>>, vector<1x32xf32>
    %5 = vector.broadcast %4 : vector<1x32xf32> to vector<256x32xf32>
    %6 = arith.mulf %3, %5 : vector<256x32xf32>
    %c0_5 = arith.constant 0 : index
    %c0_6 = arith.constant 0 : index
    %7 = vector.load %arg4[%c0_5, %c0_6] : memref<1x32xf32, #tpu.memory_space<vmem>>, vector<1x32xf32>
    %8 = vector.broadcast %7 : vector<1x32xf32> to vector<256x32xf32>
    %9 = arith.addf %6, %8 : vector<256x32xf32>
    %cst_7 = arith.constant 0.000000e+00 : f32
    %10 = vector.broadcast %cst_7 : f32 to vector<256x32xf32>
    %11 = arith.maximumf %9, %10 : vector<256x32xf32>
    %c0_8 = arith.constant 0 : index
    %c0_9 = arith.constant 0 : index
    %12 = vector.load %arg5[%c0_8, %c0_9] : memref<256x32xf32, #tpu.memory_space<vmem>>, vector<256x32xf32>
    tpu.vector_store %arg5[%c0_8, %c0_9], %11 {strides = array<i32>} : memref<256x32xf32, #tpu.memory_space<vmem>>, vector<256x32xf32>,
    return
  }
  func.func @transform_0(%arg0: i32) -> (i32, i32) {
    %c0_i32 = arith.constant 0 : i32
    %c0_i32_0 = arith.constant 0 : i32
    return %arg0, %c0_i32 : i32, i32
  }
  func.func @transform_1(%arg0: i32) -> (i32, i32) {
    %c0_i32 = arith.constant 0 : i32
    %c0_i32_0 = arith.constant 0 : i32
    %c0_i32_1 = arith.constant 0 : i32
    return %c0_i32, %c0_i32_0 : i32, i32
  }
  func.func @transform_2(%arg0: i32) -> (i32, i32) {
    %c0_i32 = arith.constant 0 : i32
    %c0_i32_0 = arith.constant 0 : i32
    %c0_i32_1 = arith.constant 0 : i32
    return %c0_i32, %c0_i32_0 : i32, i32
  }
  func.func @transform_3(%arg0: i32) -> (i32, i32) {
    %c0_i32 = arith.constant 0 : i32
    %c0_i32_0 = arith.constant 0 : i32
    %c0_i32_1 = arith.constant 0 : i32
    return %c0_i32, %c0_i32_0 : i32, i32
  }
  func.func @transform_4(%arg0: i32) -> (i32, i32) {
    %c0_i32 = arith.constant 0 : i32
    %c0_i32_0 = arith.constant 0 : i32
    return %arg0, %c0_i32 : i32, i32
  }
}

</mosaic_0001>

<bundles_post_ra>
// kernel: tpu_custom_call.1
= control target key start
LH: loop header
LB: loop body
LE: loop exit
PB: predicated region body
PF: predicated region fallthrough
CT: control target
= control target key end

     0   :  { %s682_s15 = smov 0   ;;  %s902_s0 = inlined_call_operand.vmem [shape: f32[512,32], index: 0, kind: input, shape index: {}]   ;;  %s903_s1 = inlined_call_operand.vmem [shape: bf16[32,32], index: 1, kind: input, shape index: {}]   ;;  %s904_s2 = inlined_call_operand.vmem [shape: f32[1,32], index: 2, kind: input, shape index: {}]   ;;  %s905_s3 = inlined_call_operand.vmem [shape: f32[1,32], index: 3, kind: input, shape index: {}]   ;;  %s906_s4 = inlined_call_operand.vmem [shape: f32[512,32], index: 4, kind: output, shape index: {}]  }
   0x1 LB: > { %s596_s16 = sadd.s32 4294967295, %s655_s15   ;;  %p600_p0 = scmp.ge.s32.totalorder %s655_s15, 1  ;;  %s655_s15 = sphi %s682_s15, %s14_s15  }
   0x2   : > { %p163_p1 = scmp.lt.s32.totalorder %s655_s15, 3 }
   0x4   : > { %p164_p2 = pnand %p600_p0, %p163_p1 }
   0x5   : > { %s601_s19 = sshll.u32 (!%p164_p2), %s596_s16, 5 }
   0x6   : > { %167 = sbr.rel (%p164_p2) target bundleno = 216 (0xd8), region = 36  ;;  %p190_p3 = scmp.lt.s32.totalorder (!%p164_p2), %s601_s19, 63 }
   0xb   : > { %v632_v0 = vld [vmem:[%s903_s1 + $0x8] sm:$0xff]  ;;  %v631_v1 = vld [vmem:[%s903_s1] sm:$0xff]  ;;  %s908_s19 = smov (!%p190_p3, %s601_s19), 63  ;;  %vm266_vm0 = vcmask 261120  }
   0xc   : > { %321 = vmatpush.bf16.msra.mxu0 %v632_v0  ;;  %633 = vmatpush.bf16.msra.mxu1 %v632_v0  ;;  %s602_s22 = sshll.u32 %s908_s19, 3  ;;  %v757_v50 = vld [vmem:[%s904_s2] ss:$0 sm:$0xff] }
   0xd   : > { %634 = vmatpush.bf16.msra.mxu2 %v632_v0  ;;  %635 = vmatpush.bf16.msra.mxu3 %v632_v0  ;;  %s704_s25 = scalar_lea.vmem %s902_s0, %s602_s22  ;;  %v762_v51 = vld [vmem:[%s905_s3] ss:$0 sm:$0xff]  ;;  %s772_s6 = scalar_lea.vmem %s906_s4, %s602_s22 }
   0xe   : > { %v202_v2 = vld [vmem:[%s704_s25] sm:$0xff]  ;;  %v203_v3 = vld [vmem:[%s704_s25 + $0x8] sm:$0xff]  ;;  %v204_v14 = vld [vmem:[%s704_s25 + $0x10] sm:$0xff] }
   0xf   : > { %v210_v4 = vld [vmem:[%s704_s25 + $0x40] sm:$0xff]  ;;  %v234_v5 = vpack.c.bf16 %v203_v3, %v202_v2  ;;  %v211_v6 = vld [vmem:[%s704_s25 + $0x48] sm:$0xff]  ;;  %v205_v15 = vld [vmem:[%s704_s25 + $0x18] sm:$0xff] }
  0x10   : > { %322 = vmatpush.bf16.msra.mxu0 %v631_v1  ;;  %636 = vmatpush.bf16.msra.mxu1 %v631_v1  ;;  %v218_v7 = vld [vmem:[%s704_s25 + $0x80] sm:$0xff]  ;;  %v219_v8 = vld [vmem:[%s704_s25 + $0x88] sm:$0xff]  ;;  %v238_v9 = vpack.c.bf16 %v211_v6, %v210_v4  ;;  %v212_v16 = vld [vmem:[%s704_s25 + $0x50] sm:$0xff]  ;;  %v235_v22 = vpack.c.bf16 %v205_v15, %v204_v14 }
  0x11   : > { %637 = vmatpush.bf16.msra.mxu2 %v631_v1  ;;  %638 = vmatpush.bf16.msra.mxu3 %v631_v1  ;;  %v242_v10 = vpack.c.bf16 %v219_v8, %v218_v7  ;;  %v226_v11 = vld [vmem:[%s704_s25 + $0xc0] sm:$0xff]  ;;  %v227_v12 = vld [vmem:[%s704_s25 + $0xc8] sm:$0xff]  ;;  %v213_v17 = vld [vmem:[%s704_s25 + $0x58] sm:$0xff] }
  0x12   : > { %v246_v13 = vpack.c.bf16 %v227_v12, %v226_v11  ;;  %v220_v18 = vld [vmem:[%s704_s25 + $0x90] sm:$0xff]  ;;  %v221_v19 = vld [vmem:[%s704_s25 + $0x98] sm:$0xff]  ;;  %v239_v23 = vpack.c.bf16 %v213_v17, %v212_v16  ;;  %v206_v26 = vld [vmem:[%s704_s25 + $0x20] sm:$0xff] }
  0x13   : > { %613 = vmatmul.msk.bf16.vlgmr.msra.gmra.mxu0 %vm266_vm0, %v234_v5  ;;  %617 = vmatmul.msk.bf16.vlgmr.msra.gmra.mxu1 %vm266_vm0, %v238_v9  ;;  %v228_v20 = vld [vmem:[%s704_s25 + $0xd0] sm:$0xff]  ;;  %v229_v21 = vld [vmem:[%s704_s25 + $0xd8] sm:$0xff]  ;;  %v243_v24 = vpack.c.bf16 %v221_v19, %v220_v18  ;;  %v207_v27 = vld [vmem:[%s704_s25 + $0x28] sm:$0xff] }
  0x14   : > { %621 = vmatmul.msk.bf16.vlgmr.msra.gmra.mxu2 %vm266_vm0, %v242_v10  ;;  %625 = vmatmul.msk.bf16.vlgmr.msra.gmra.mxu3 %vm266_vm0, %v246_v13  ;;  %v247_v25 = vpack.c.bf16 %v229_v21, %v228_v20  ;;  %v214_v28 = vld [vmem:[%s704_s25 + $0x60] sm:$0xff]  ;;  %v215_v29 = vld [vmem:[%s704_s25 + $0x68] sm:$0xff]  ;;  %v236_v34 = vpack.c.bf16 %v207_v27, %v206_v26  ;;  %v208_v38 = vld [vmem:[%s704_s25 + $0x30] sm:$0xff] }
  0x15   : > { %v222_v30 = vld [vmem:[%s704_s25 + $0xa0] sm:$0xff]  ;;  %v223_v31 = vld [vmem:[%s704_s25 + $0xa8] sm:$0xff]  ;;  %v240_v35 = vpack.c.bf16 %v215_v29, %v214_v28  ;;  %v209_v39 = vld [vmem:[%s704_s25 + $0x38] sm:$0xff] }
  0x16   : > { %v230_v32 = vld [vmem:[%s704_s25 + $0xe0] sm:$0xff]  ;;  %v231_v33 = vld [vmem:[%s704_s25 + $0xe8] sm:$0xff]  ;;  %v244_v36 = vpack.c.bf16 %v223_v31, %v222_v30  ;;  %v216_v40 = vld [vmem:[%s704_s25 + $0x70] sm:$0xff]  ;;  %v237_v46 = vpack.c.bf16 %v209_v39, %v208_v38 }
  0x17   : > { %v248_v37 = vpack.c.bf16 %v231_v33, %v230_v32  ;;  %v217_v41 = vld [vmem:[%s704_s25 + $0x78] sm:$0xff]  ;;  %v224_v42 = vld [vmem:[%s704_s25 + $0xb0] sm:$0xff] }
  0x18   : > { %v225_v43 = vld [vmem:[%s704_s25 + $0xb8] sm:$0xff]  ;;  %v232_v44 = vld [vmem:[%s704_s25 + $0xf0] sm:$0xff]  ;;  %v241_v47 = vpack.c.bf16 %v217_v41, %v216_v40 }
  0x19   : > { %v233_v45 = vld [vmem:[%s704_s25 + $0xf8] sm:$0xff]  ;;  %v245_v48 = vpack.c.bf16 %v225_v43, %v224_v42 }
  0x1a   : > { %v249_v49 = vpack.c.bf16 %v233_v45, %v232_v44 }
  0x23   : > { %614 = vmatmul.msk.bf16.gmra.mxu0 %vm266_vm0, %v235_v22  ;;  %618 = vmatmul.msk.bf16.gmra.mxu1 %vm266_vm0, %v239_v23 }
  0x24   : > { %622 = vmatmul.msk.bf16.gmra.mxu2 %vm266_vm0, %v243_v24  ;;  %626 = vmatmul.msk.bf16.gmra.mxu3 %vm266_vm0, %v247_v25 }
  0x33   : > { %615 = vmatmul.msk.bf16.gmra.mxu0 %vm266_vm0, %v236_v34  ;;  %619 = vmatmul.msk.bf16.gmra.mxu1 %vm266_vm0, %v240_v35 }
  0x34   : > { %623 = vmatmul.msk.bf16.gmra.mxu2 %vm266_vm0, %v244_v36  ;;  %627 = vmatmul.msk.bf16.gmra.mxu3 %vm266_vm0, %v248_v37 }
  0x43   : > { %616 = vmatmul.msk.bf16.gmra.mxu0 %vm266_vm0, %v237_v46  ;;  %620 = vmatmul.msk.bf16.gmra.mxu1 %vm266_vm0, %v241_v47 }
  0x44   : > { %624 = vmatmul.msk.bf16.gmra.mxu2 %vm266_vm0, %v245_v48  ;;  %628 = vmatmul.msk.bf16.gmra.mxu3 %vm266_vm0, %v249_v49 }
  0x90   : > { %v324_v52 = vpop.f32.mrf.mxu0  ;;  %v344_v54 = vpop.f32.mrf.mxu1 }
  0x91   : > { %v408_v53 = vmul.f32 %v757_v50, %v324_v52  ;;  %v416_v55 = vmul.f32 %v757_v50, %v344_v54 }
  0x93   : > { %v444_v56 = vadd.f32 %v762_v51, %v408_v53  ;;  %v452_v57 = vadd.f32 %v762_v51, %v416_v55 }
  0x95   : > { %v476_v58 = vmax.f32 %v444_v56, 0.0  ;;  %v484_v59 = vmax.f32 %v452_v57, 0.0 }
  0x97   : > { %508 = vst.msk [vmem:[%s772_s6] sm:$0xff] %vm266_vm0, %v476_v58  ;;  %v364_v60 = vpop.f32.mrf.mxu2  ;;  %v384_v62 = vpop.f32.mrf.mxu3 }
  0x98   : > { %516 = vst.msk [vmem:[%s772_s6 + $0x40] sm:$0xff] %vm266_vm0, %v484_v59  ;;  %v424_v61 = vmul.f32 %v757_v50, %v364_v60  ;;  %v326_v63 = vpop.f32.mrf.mxu0  ;;  %v432_v0 = vmul.f32 %v757_v50, %v384_v62  ;;  %v346_v2 = vpop.f32.mrf.mxu1 }
  0x99   : > { %v409_v1 = vmul.f32 %v757_v50, %v326_v63  ;;  %v417_v4 = vmul.f32 %v757_v50, %v346_v2 }
  0x9a   : > { %v460_v3 = vadd.f32 %v762_v51, %v424_v61  ;;  %v468_v5 = vadd.f32 %v762_v51, %v432_v0 }
  0x9b   : > { %v445_v6 = vadd.f32 %v762_v51, %v409_v1  ;;  %v453_v8 = vadd.f32 %v762_v51, %v417_v4 }
  0x9c   : > { %v492_v7 = vmax.f32 %v460_v3, 0.0  ;;  %v500_v9 = vmax.f32 %v468_v5, 0.0 }
  0x9d   : > { %v477_v10 = vmax.f32 %v445_v6, 0.0  ;;  %v485_v11 = vmax.f32 %v453_v8, 0.0 }
  0x9e   : > { %524 = vst.msk [vmem:[%s772_s6 + $0x80] sm:$0xff] %vm266_vm0, %v492_v7 }
  0x9f   : > { %532 = vst.msk [vmem:[%s772_s6 + $0xc0] sm:$0xff] %vm266_vm0, %v500_v9  ;;  %v366_v12 = vpop.f32.mrf.mxu2  ;;  %v386_v14 = vpop.f32.mrf.mxu3 }
  0xa0   : > { %509 = vst.msk [vmem:[%s772_s6 + $0x8] sm:$0xff] %vm266_vm0, %v477_v10  ;;  %v425_v13 = vmul.f32 %v757_v50, %v366_v12  ;;  %v329_v15 = vpop.f32.mrf.mxu0  ;;  %v433_v16 = vmul.f32 %v757_v50, %v386_v14  ;;  %v349_v18 = vpop.f32.mrf.mxu1 }
  0xa1   : > { %517 = vst.msk [vmem:[%s772_s6 + $0x48] sm:$0xff] %vm266_vm0, %v485_v11  ;;  %v410_v17 = vmul.f32 %v757_v50, %v329_v15  ;;  %v418_v20 = vmul.f32 %v757_v50, %v349_v18 }
  0xa2   : > { %v461_v19 = vadd.f32 %v762_v51, %v425_v13  ;;  %v469_v21 = vadd.f32 %v762_v51, %v433_v16 }
  0xa3   : > { %v446_v22 = vadd.f32 %v762_v51, %v410_v17  ;;  %v454_v24 = vadd.f32 %v762_v51, %v418_v20 }
  0xa4   : > { %v493_v23 = vmax.f32 %v461_v19, 0.0  ;;  %v501_v25 = vmax.f32 %v469_v21, 0.0 }
  0xa5   : > { %v478_v26 = vmax.f32 %v446_v22, 0.0  ;;  %v486_v27 = vmax.f32 %v454_v24, 0.0 }
  0xa6   : > { %525 = vst.msk [vmem:[%s772_s6 + $0x88] sm:$0xff] %vm266_vm0, %v493_v23 }
  0xa7   : > { %533 = vst.msk [vmem:[%s772_s6 + $0xc8] sm:$0xff] %vm266_vm0, %v501_v25  ;;  %v369_v28 = vpop.f32.mrf.mxu2  ;;  %v389_v30 = vpop.f32.mrf.mxu3 }
  0xa8   : > { %510 = vst.msk [vmem:[%s772_s6 + $0x10] sm:$0xff] %vm266_vm0, %v478_v26  ;;  %v426_v29 = vmul.f32 %v757_v50, %v369_v28  ;;  %v331_v31 = vpop.f32.mrf.mxu0  ;;  %v434_v32 = vmul.f32 %v757_v50, %v389_v30  ;;  %v351_v34 = vpop.f32.mrf.mxu1 }
  0xa9   : > { %518 = vst.msk [vmem:[%s772_s6 + $0x50] sm:$0xff] %vm266_vm0, %v486_v27  ;;  %v411_v33 = vmul.f32 %v757_v50, %v331_v31  ;;  %v419_v36 = vmul.f32 %v757_v50, %v351_v34 }
  0xaa   : > { %v462_v35 = vadd.f32 %v762_v51, %v426_v29  ;;  %v470_v37 = vadd.f32 %v762_v51, %v434_v32 }
  0xab   : > { %v447_v38 = vadd.f32 %v762_v51, %v411_v33  ;;  %v455_v40 = vadd.f32 %v762_v51, %v419_v36 }
  0xac   : > { %v494_v39 = vmax.f32 %v462_v35, 0.0  ;;  %v502_v41 = vmax.f32 %v470_v37, 0.0 }
  0xad   : > { %v479_v42 = vmax.f32 %v447_v38, 0.0  ;;  %v487_v43 = vmax.f32 %v455_v40, 0.0 }
  0xae   : > { %526 = vst.msk [vmem:[%s772_s6 + $0x90] sm:$0xff] %vm266_vm0, %v494_v39 }
  0xaf   : > { %534 = vst.msk [vmem:[%s772_s6 + $0xd0] sm:$0xff] %vm266_vm0, %v502_v41  ;;  %v371_v44 = vpop.f32.mrf.mxu2  ;;  %v391_v46 = vpop.f32.mrf.mxu3 }
  0xb0   : > { %511 = vst.msk [vmem:[%s772_s6 + $0x18] sm:$0xff] %vm266_vm0, %v479_v42  ;;  %v427_v45 = vmul.f32 %v757_v50, %v371_v44  ;;  %v334_v47 = vpop.f32.mrf.mxu0  ;;  %v435_v48 = vmul.f32 %v757_v50, %v391_v46  ;;  %v354_v52 = vpop.f32.mrf.mxu1 }
  0xb1   : > { %519 = vst.msk [vmem:[%s772_s6 + $0x58] sm:$0xff] %vm266_vm0, %v487_v43  ;;  %v412_v49 = vmul.f32 %v757_v50, %v334_v47  ;;  %v420_v54 = vmul.f32 %v757_v50, %v354_v52 }
  0xb2   : > { %v463_v53 = vadd.f32 %v762_v51, %v427_v45  ;;  %v471_v55 = vadd.f32 %v762_v51, %v435_v48 }
  0xb3   : > { %v448_v56 = vadd.f32 %v762_v51, %v412_v49  ;;  %v456_v58 = vadd.f32 %v762_v51, %v420_v54 }
  0xb4   : > { %v495_v57 = vmax.f32 %v463_v53, 0.0  ;;  %v503_v59 = vmax.f32 %v471_v55, 0.0 }
  0xb5   : > { %v480_v60 = vmax.f32 %v448_v56, 0.0  ;;  %v488_v61 = vmax.f32 %v456_v58, 0.0 }
  0xb6   : > { %527 = vst.msk [vmem:[%s772_s6 + $0x98] sm:$0xff] %vm266_vm0, %v495_v57 }
  0xb7   : > { %535 = vst.msk [vmem:[%s772_s6 + $0xd8] sm:$0xff] %vm266_vm0, %v503_v59  ;;  %v374_v62 = vpop.f32.mrf.mxu2  ;;  %v394_v0 = vpop.f32.mrf.mxu3 }
  0xb8   : > { %512 = vst.msk [vmem:[%s772_s6 + $0x20] sm:$0xff] %vm266_vm0, %v480_v60  ;;  %v428_v63 = vmul.f32 %v757_v50, %v374_v62  ;;  %v336_v1 = vpop.f32.mrf.mxu0  ;;  %v436_v2 = vmul.f32 %v757_v50, %v394_v0  ;;  %v356_v4 = vpop.f32.mrf.mxu1 }
  0xb9   : > { %520 = vst.msk [vmem:[%s772_s6 + $0x60] sm:$0xff] %vm266_vm0, %v488_v61  ;;  %v413_v3 = vmul.f32 %v757_v50, %v336_v1  ;;  %v421_v6 = vmul.f32 %v757_v50, %v356_v4 }
  0xba   : > { %v464_v5 = vadd.f32 %v762_v51, %v428_v63  ;;  %v472_v7 = vadd.f32 %v762_v51, %v436_v2 }
  0xbb   : > { %v449_v8 = vadd.f32 %v762_v51, %v413_v3  ;;  %v457_v10 = vadd.f32 %v762_v51, %v421_v6 }
  0xbc   : > { %v496_v9 = vmax.f32 %v464_v5, 0.0  ;;  %v504_v11 = vmax.f32 %v472_v7, 0.0 }
  0xbd   : > { %v481_v12 = vmax.f32 %v449_v8, 0.0  ;;  %v489_v13 = vmax.f32 %v457_v10, 0.0 }
  0xbe   : > { %528 = vst.msk [vmem:[%s772_s6 + $0xa0] sm:$0xff] %vm266_vm0, %v496_v9 }
  0xbf   : > { %536 = vst.msk [vmem:[%s772_s6 + $0xe0] sm:$0xff] %vm266_vm0, %v504_v11  ;;  %v376_v14 = vpop.f32.mrf.mxu2  ;;  %v396_v16 = vpop.f32.mrf.mxu3 }
  0xc0   : > { %513 = vst.msk [vmem:[%s772_s6 + $0x28] sm:$0xff] %vm266_vm0, %v481_v12  ;;  %v429_v15 = vmul.f32 %v757_v50, %v376_v14  ;;  %v339_v17 = vpop.f32.mrf.mxu0  ;;  %v437_v18 = vmul.f32 %v757_v50, %v396_v16  ;;  %v359_v20 = vpop.f32.mrf.mxu1 }
  0xc1   : > { %521 = vst.msk [vmem:[%s772_s6 + $0x68] sm:$0xff] %vm266_vm0, %v489_v13  ;;  %v414_v19 = vmul.f32 %v757_v50, %v339_v17  ;;  %v422_v22 = vmul.f32 %v757_v50, %v359_v20 }
  0xc2   : > { %v465_v21 = vadd.f32 %v762_v51, %v429_v15  ;;  %v473_v23 = vadd.f32 %v762_v51, %v437_v18 }
  0xc3   : > { %v450_v24 = vadd.f32 %v762_v51, %v414_v19  ;;  %v458_v26 = vadd.f32 %v762_v51, %v422_v22 }
  0xc4   : > { %v497_v25 = vmax.f32 %v465_v21, 0.0  ;;  %v505_v27 = vmax.f32 %v473_v23, 0.0 }
  0xc5   : > { %v482_v28 = vmax.f32 %v450_v24, 0.0  ;;  %v490_v29 = vmax.f32 %v458_v26, 0.0 }
  0xc6   : > { %529 = vst.msk [vmem:[%s772_s6 + $0xa8] sm:$0xff] %vm266_vm0, %v497_v25 }
  0xc7   : > { %537 = vst.msk [vmem:[%s772_s6 + $0xe8] sm:$0xff] %vm266_vm0, %v505_v27  ;;  %v379_v30 = vpop.f32.mrf.mxu2  ;;  %v399_v32 = vpop.f32.mrf.mxu3 }
  0xc8   : > { %514 = vst.msk [vmem:[%s772_s6 + $0x30] sm:$0xff] %vm266_vm0, %v482_v28  ;;  %v430_v31 = vmul.f32 %v757_v50, %v379_v30  ;;  %v341_v33 = vpop.f32.mrf.mxu0  ;;  %v438_v34 = vmul.f32 %v757_v50, %v399_v32  ;;  %v361_v36 = vpop.f32.mrf.mxu1 }
  0xc9   : > { %522 = vst.msk [vmem:[%s772_s6 + $0x70] sm:$0xff] %vm266_vm0, %v490_v29  ;;  %v415_v35 = vmul.f32 %v757_v50, %v341_v33  ;;  %v423_v38 = vmul.f32 %v757_v50, %v361_v36 }
  0xca   : > { %v466_v37 = vadd.f32 %v762_v51, %v430_v31  ;;  %v474_v39 = vadd.f32 %v762_v51, %v438_v34 }
  0xcb   : > { %v451_v40 = vadd.f32 %v762_v51, %v415_v35  ;;  %v459_v42 = vadd.f32 %v762_v51, %v423_v38 }
  0xcc   : > { %v498_v41 = vmax.f32 %v466_v37, 0.0  ;;  %v506_v43 = vmax.f32 %v474_v39, 0.0 }
  0xcd   : > { %v483_v44 = vmax.f32 %v451_v40, 0.0  ;;  %v491_v45 = vmax.f32 %v459_v42, 0.0 }
  0xce   : > { %530 = vst.msk [vmem:[%s772_s6 + $0xb0] sm:$0xff] %vm266_vm0, %v498_v41 }
  0xcf   : > { %538 = vst.msk [vmem:[%s772_s6 + $0xf0] sm:$0xff] %vm266_vm0, %v506_v43  ;;  %v381_v46 = vpop.f32.mrf.mxu2  ;;  %v401_v48 = vpop.f32.mrf.mxu3 }
  0xd0   : > { %515 = vst.msk [vmem:[%s772_s6 + $0x38] sm:$0xff] %vm266_vm0, %v483_v44  ;;  %v431_v47 = vmul.f32 %v757_v50, %v381_v46  ;;  %v439_v49 = vmul.f32 %v757_v50, %v401_v48 }
  0xd1   : > { %523 = vst.msk [vmem:[%s772_s6 + $0x78] sm:$0xff] %vm266_vm0, %v491_v45 }
  0xd2   : > { %v467_v52 = vadd.f32 %v762_v51, %v431_v47  ;;  %v475_v53 = vadd.f32 %v762_v51, %v439_v49 }
  0xd4   : > { %v499_v54 = vmax.f32 %v467_v52, 0.0  ;;  %v507_v55 = vmax.f32 %v475_v53, 0.0 }
  0xd6   : > { %531 = vst.msk [vmem:[%s772_s6 + $0xb8] sm:$0xff] %vm266_vm0, %v499_v54 }
  0xd7   : > { %539 = vst.msk [vmem:[%s772_s6 + $0xf8] sm:$0xff] %vm266_vm0, %v507_v55 }
  0xd8 PF: > { %s14_s15 = sadd.s32 1, %s655_s15  }
  0xd9   : > { %p11_p4 = scmp.ge.s32.totalorder %s14_s15, 4  }
  0xdb   :  { %13 = sbr.rel (!%p11_p4) target bundleno = 1 (0x1), region = 66 }

</bundles_post_ra>
